<compile_context>
chip_gen: v7x
topology: tpu7x:2x2x1
jax: 0.10.0
libtpu: 0.0.40
codegen_flags: <defaults>
</compile_context>

<pallas_src>
import functools

import jax
import jax.numpy as jnp
from jax.experimental import pallas as pl
from jax.experimental.pallas import tpu as pltpu

BN_EPS = 1e-5


def _round_up(n, m):
    return ((n + m - 1) // m) * m


def _pad2d(a, rows, cols, dtype, fill=0.0):
    out = jnp.full((rows, cols), fill, dtype)
    return out.at[:a.shape[0], :a.shape[1]].set(a.astype(dtype))


def _simplenn_kernel(*refs, apply_bn, b_true, b_padded):
    """Fused forward: bf16 MXU matmuls, f32 BN reductions + ReLU on VPU."""
    f32 = jnp.float32
    bf16 = jnp.bfloat16

    if apply_bn:
        (x_ref, w1_ref, g1_ref, bt1_ref,
         w2_ref, g2_ref, bt2_ref,
         w3_ref, b3_ref, o_ref) = refs
    else:
        (x_ref, w1_ref, b1_ref,
         w2_ref, b2_ref,
         w3_ref, b3_ref, o_ref) = refs

    # Validity mask over padded batch rows (hoisted; only needed when padded
    # rows exist AND BN is applied).
    if apply_bn and b_padded > b_true:
        mask = (jax.lax.broadcasted_iota(jnp.int32, (b_padded, 1), 0)
                < b_true).astype(f32)
    else:
        mask = None

    def batchnorm(h, g_ref, bt_ref):
        # Training-mode batch statistics (biased variance), single reduction
        # pass in f32, fused into one scale/shift per element.
        # (E[x^2]-E[x]^2 with clamp; fine at these magnitudes -- see review.)
        hm = h if mask is None else h * mask
        inv_n = f32(1.0 / b_true)
        mu = jnp.sum(hm, axis=0, keepdims=True) * inv_n
        msq = jnp.sum(h * hm, axis=0, keepdims=True) * inv_n
        var = jnp.maximum(msq - mu * mu, 0.0)
        scale = g_ref[...] * jax.lax.rsqrt(var + BN_EPS)   # rsqrt -> EUP slot
        shift = bt_ref[...] - mu * scale
        return h * scale + shift

    # ---- fc1 (bf16 x bf16 -> f32 accumulate).  Bias is redundant under BN. ----
    h = jnp.dot(x_ref[...], w1_ref[...], preferred_element_type=f32)
    if apply_bn:
        h = batchnorm(h, g1_ref, bt1_ref)
    else:
        h = h + b1_ref[...]
    h = jnp.maximum(h, 0.0)

    # ---- fc2 ----
    h = jnp.dot(h.astype(bf16), w2_ref[...], preferred_element_type=f32)
    if apply_bn:
        h = batchnorm(h, g2_ref, bt2_ref)
    else:
        h = h + b2_ref[...]
    h = jnp.maximum(h, 0.0)

    # ---- fc3 (lane-dense padded output, unmasked stores) ----
    out = jnp.dot(h.astype(bf16), w3_ref[...], preferred_element_type=f32) + b3_ref[...]
    o_ref[...] = out.astype(o_ref.dtype)


def _vmem_limit_bytes(resident_bytes):
    """Generation-aware scoped-VMEM limit: footprint-derived, capped at ~75%
    of this chip's physical VMEM (headroom for compiler scratch / DMA bufs)."""
    try:
        cap = int(getattr(pltpu.get_tpu_info(), "vmem_capacity_bytes"))
    except Exception:
        cap = 64 * 2 ** 20   # conservative fallback: v7x per-TensorCore VMEM
    ceiling = (cap * 3) // 4
    return int(max(8 * 2 ** 20, min(ceiling, 4 * resident_bytes)))


def prepare_params(params):
    """One-time padding / bf16 casting of weights and BN params to
    hardware-granular shapes.  Call once; reuse the result every forward."""
    F, H = params["w1"].shape
    C = params["w3"].shape[1]
    Fp, Hp, Cp = _round_up(F, 128), _round_up(H, 128), _round_up(C, 128)
    bf16, f32 = jnp.bfloat16, jnp.float32

    prep = dict(
        dims=(F, H, C, Fp, Hp, Cp),
        # Matmul operands in bf16 (padded rows/cols are exact zeros).
        w1=_pad2d(params["w1"], Fp, Hp, bf16),
        w2=_pad2d(params["w2"], Hp, Hp, bf16),
        w3=_pad2d(params["w3"], Hp, Cp, bf16),
        # Bias / BN affine rows stay f32.
        b1=_pad2d(params["b1"], 1, Hp, f32),
        b2=_pad2d(params["b2"], 1, Hp, f32),
        b3=_pad2d(params["b3"], 1, Cp, f32),
        g1=_pad2d(params["g1"], 1, Hp, f32, fill=1.0),
        g2=_pad2d(params["g2"], 1, Hp, f32, fill=1.0),
        bt1=_pad2d(params["bt1"], 1, Hp, f32),
        bt2=_pad2d(params["bt2"], 1, Hp, f32),
    )
    # Materialize now so the pad/cast never re-runs on the per-call path.
    return jax.block_until_ready(prep)


def simplenn_forward(x, prep):
    """Fused SimpleNN forward as a single Pallas call.

    x: [B, input_size] float32
    prep: dict from prepare_params (pre-padded, pre-cast parameters).
    """
    B, F = x.shape
    F0, H, C, Fp, Hp, Cp = prep["dims"]
    assert F == F0, f"input_size mismatch: {F} vs {F0}"

    # bf16 packs 16 sublanes per vreg -> round batch to 16; lanes already 128.
    Bp = _round_up(max(B, 1), 16)
    xp = _pad2d(x, Bp, Fp, jnp.bfloat16)   # only per-call padding work

    apply_bn = B > 1  # static shape check, mirrors `if out.shape[0] > 1`

    if apply_bn:
        operands = (xp, prep["w1"], prep["g1"], prep["bt1"],
                    prep["w2"], prep["g2"], prep["bt2"],
                    prep["w3"], prep["b3"])
    else:
        operands = (xp, prep["w1"], prep["b1"],
                    prep["w2"], prep["b2"],
                    prep["w3"], prep["b3"])

    # Full-array blocks (block_shape == array shape satisfies tiling rules);
    # everything stays VMEM-resident for the single-block call.
    in_specs = [pl.BlockSpec(op.shape, lambda *_: (0, 0)) for op in operands]
    out_spec = pl.BlockSpec((Bp, Cp), lambda *_: (0, 0))

    # Footprint (padded, what actually lives in VMEM) -> generation-aware cap.
    param_bytes = sum(int(op.size) * op.dtype.itemsize for op in operands)
    out_bytes = Bp * Cp * 4
    inter_bytes = 3 * Bp * Hp * 4 + 2 * Bp * Hp * 2   # f32 h + bf16 casts
    vmem_limit = _vmem_limit_bytes(param_bytes + out_bytes + inter_bytes)

    # Advisory cost with TRUE (unpadded) dims.
    true_weight_bytes = (F * H + H * H + H * C) * 2
    true_vec_bytes = ((4 * H + C) if apply_bn else (2 * H + C)) * 4
    cost = pl.CostEstimate(
        flops=2 * B * (F * H + H * H + H * C),
        transcendentals=(2 * H) if apply_bn else 0,      # rsqrt per BN feature
        bytes_accessed=B * F * 2 + true_weight_bytes + true_vec_bytes + B * C * 4,
    )

    kernel = functools.partial(_simplenn_kernel,
                               apply_bn=apply_bn, b_true=B, b_padded=Bp)

    out_padded = pl.pallas_call(
        kernel,
        out_shape=jax.ShapeDtypeStruct((Bp, Cp), jnp.float32),
        in_specs=in_specs,
        out_specs=out_spec,
        compiler_params=pltpu.CompilerParams(vmem_limit_bytes=vmem_limit),
        cost_estimate=cost,
    )(*operands)

    return out_padded[:B, :C]


def init_params(key, input_size, hidden_size, num_classes):
    """Deterministic synthetic parameter init (shapes match the PyTorch module)."""
    keys = jax.random.split(key, 6)

    def linear_init(kw, kb, fan_in, fan_out):
        # PyTorch Linear default: U(-1/sqrt(fan_in), 1/sqrt(fan_in))
        bound = 1.0 / jnp.sqrt(jnp.float32(fan_in))
        w = jax.random.uniform(kw, (fan_in, fan_out), jnp.float32, -bound, bound)
        b = jax.random.uniform(kb, (1, fan_out), jnp.float32, -bound, bound)
        return w, b

    w1, b1 = linear_init(keys[0], keys[1], input_size, hidden_size)
    w2, b2 = linear_init(keys[2], keys[3], hidden_size, hidden_size)
    w3, b3 = linear_init(keys[4], keys[5], hidden_size, num_classes)

    # BatchNorm1d default affine init: gamma = 1, beta = 0
    g1 = jnp.ones((1, hidden_size), jnp.float32)
    bt1 = jnp.zeros((1, hidden_size), jnp.float32)
    g2 = jnp.ones((1, hidden_size), jnp.float32)
    bt2 = jnp.zeros((1, hidden_size), jnp.float32)

    return dict(w1=w1, b1=b1, g1=g1, bt1=bt1,
                w2=w2, b2=b2, g2=g2, bt2=bt2,
                w3=w3, b3=b3)


def _reference_forward(x, params, matmul_dtype=jnp.float32):
    """Pure-JAX reference.  matmul_dtype=bfloat16 mirrors the kernel numerics;
    matmul_dtype=float32 is the full-precision semantic reference."""

    def mm(a, w):
        return jnp.dot(a.astype(matmul_dtype), w.astype(matmul_dtype),
                       preferred_element_type=jnp.float32)

    def bn(h, g, bt):
        mu = jnp.mean(h, axis=0, keepdims=True)
        var = jnp.maximum(jnp.mean(h * h, axis=0, keepdims=True) - mu * mu, 0.0)
        scale = g * jax.lax.rsqrt(var + BN_EPS)
        return h * scale + (bt - mu * scale)

    apply_bn = x.shape[0] > 1
    h = mm(x, params["w1"]) + params["b1"]
    if apply_bn:
        h = bn(h, params["g1"], params["bt1"])
    h = jnp.maximum(h, 0.0)
    h = mm(h, params["w2"]) + params["b2"]
    if apply_bn:
        h = bn(h, params["g2"], params["bt2"])
    h = jnp.maximum(h, 0.0)
    return mm(h, params["w3"]) + params["b3"]


if __name__ == "__main__":
    # Small shapes consistent with the module's forward: x is [batch, input_size].
    batch, input_size, hidden_size, num_classes = 8, 16, 32, 4

    key = jax.random.PRNGKey(0)
    k_x, k_p = jax.random.split(key)
    x = jax.random.normal(k_x, (batch, input_size), jnp.float32)
    params = init_params(k_p, input_size, hidden_size, num_classes)

    # One-time param prep (padding / bf16 cast hoisted out of the call path).
    prep = prepare_params(params)

    # --- BN path (batch > 1) ---
    out = jax.block_until_ready(simplenn_forward(x, prep))
    assert out.shape == (batch, num_classes)

    ref_bf16 = _reference_forward(x, params, matmul_dtype=jnp.bfloat16)
    assert jnp.allclose(out, ref_bf16, atol=2e-3, rtol=2e-3), (
        f"max abs err vs bf16 ref: {float(jnp.max(jnp.abs(out - ref_bf16)))}")

    ref_f32 = _reference_forward(x, params, matmul_dtype=jnp.float32)
    assert jnp.allclose(out, ref_f32, atol=1e-1, rtol=1e-1), (
        f"max abs err vs f32 ref: {float(jnp.max(jnp.abs(out - ref_f32)))}")

    # --- no-BN path (batch == 1, mirrors the static shape check) ---
    x1 = x[:1]
    out1 = jax.block_until_ready(simplenn_forward(x1, prep))
    ref1 = _reference_forward(x1, params, matmul_dtype=jnp.bfloat16)
    assert out1.shape == (1, num_classes)
    assert jnp.allclose(out1, ref1, atol=2e-3, rtol=2e-3), (
        f"max abs err (B=1) vs bf16 ref: {float(jnp.max(jnp.abs(out1 - ref1)))}")

    print("KERNEL_OK")
</pallas_src>

<mosaic_0001>
module attributes {stable_mosaic.version = 11 : i64} {
  func.func @_simplenn_kernel(%arg0: memref<16x128xbf16, #tpu.memory_space<vmem>>, %arg1: memref<128x128xbf16, #tpu.memory_space<vmem>>, %arg2: memref<1x128xf32, #tpu.memory_space<vmem>>, %arg3: memref<1x128xf32, #tpu.memory_space<vmem>>, %arg4: memref<128x128xbf16, #tpu.memory_space<vmem>>, %arg5: memref<1x128xf32, #tpu.memory_space<vmem>>, %arg6: memref<1x128xf32, #tpu.memory_space<vmem>>, %arg7: memref<128x128xbf16, #tpu.memory_space<vmem>>, %arg8: memref<1x128xf32, #tpu.memory_space<vmem>>, %arg9: memref<16x128xf32, #tpu.memory_space<vmem>>) attributes {dimension_semantics = [], scalar_prefetch = 0 : i64, scratch_operands = 0 : i64, tpu.core_type = #tpu.core_type<tc>} {
    %0 = tpu.iota {dimensions = array<i32: 0>} : vector<16x1xi32>
    %c8_i32 = arith.constant 8 : i32
    %1 = vector.broadcast %c8_i32 : i32 to vector<16x1xi32>
    %2 = arith.cmpi slt, %0, %1 : vector<16x1xi32>
    %3 = arith.extui %2 : vector<16x1xi1> to vector<16x1xi32>
    %4 = arith.sitofp %3 : vector<16x1xi32> to vector<16x1xf32>
    %c0 = arith.constant 0 : index
    %c0_0 = arith.constant 0 : index
    %5 = vector.load %arg0[%c0, %c0_0] : memref<16x128xbf16, #tpu.memory_space<vmem>>, vector<16x128xbf16>
    %c0_1 = arith.constant 0 : index
    %c0_2 = arith.constant 0 : index
    %6 = vector.load %arg1[%c0_1, %c0_2] : memref<128x128xbf16, #tpu.memory_space<vmem>>, vector<128x128xbf16>
    %cst = arith.constant dense<0.000000e+00> : vector<16x128xf32>
    %7 = tpu.matmul %5, %6, %cst {dimension_numbers = #tpu.dot_dimension_numbers<[1], [0], [0], [1], [0, 0, 1, 1], [], []>} : vector<16x128xbf16>, vector<128x128xbf16>, vector<16x128xf32> -> vector<16x128xf32>
    %8 = vector.broadcast %4 : vector<16x1xf32> to vector<16x128xf32>
    %9 = arith.mulf %7, %8 : vector<16x128xf32>
    %cst_3 = arith.constant dense<0.000000e+00> : vector<128xf32>
    %10 = vector.multi_reduction <add>, %9, %cst_3 [0] : vector<16x128xf32> to vector<128xf32>
    %11 = vector.shape_cast %10 : vector<128xf32> to vector<1x128xf32>
    %cst_4 = arith.constant 1.250000e-01 : f32
    %12 = vector.broadcast %cst_4 : f32 to vector<1x128xf32>
    %13 = arith.mulf %11, %12 : vector<1x128xf32>
    %14 = arith.mulf %7, %9 : vector<16x128xf32>
    %cst_5 = arith.constant dense<0.000000e+00> : vector<128xf32>
    %15 = vector.multi_reduction <add>, %14, %cst_5 [0] : vector<16x128xf32> to vector<128xf32>
    %16 = vector.shape_cast %15 : vector<128xf32> to vector<1x128xf32>
    %cst_6 = arith.constant 1.250000e-01 : f32
    %17 = vector.broadcast %cst_6 : f32 to vector<1x128xf32>
    %18 = arith.mulf %16, %17 : vector<1x128xf32>
    %19 = arith.mulf %13, %13 : vector<1x128xf32>
    %20 = arith.subf %18, %19 : vector<1x128xf32>
    %cst_7 = arith.constant 0.000000e+00 : f32
    %21 = vector.broadcast %cst_7 : f32 to vector<1x128xf32>
    %22 = arith.maximumf %20, %21 : vector<1x128xf32>
    %c0_8 = arith.constant 0 : index
    %c0_9 = arith.constant 0 : index
    %23 = vector.load %arg2[%c0_8, %c0_9] : memref<1x128xf32, #tpu.memory_space<vmem>>, vector<1x128xf32>
    %cst_10 = arith.constant 9.99999974E-6 : f32
    %24 = vector.broadcast %cst_10 : f32 to vector<1x128xf32>
    %25 = arith.addf %22, %24 : vector<1x128xf32>
    %26 = math.rsqrt %25 : vector<1x128xf32>
    %27 = arith.mulf %23, %26 : vector<1x128xf32>
    %c0_11 = arith.constant 0 : index
    %c0_12 = arith.constant 0 : index
    %28 = vector.load %arg3[%c0_11, %c0_12] : memref<1x128xf32, #tpu.memory_space<vmem>>, vector<1x128xf32>
    %29 = arith.mulf %13, %27 : vector<1x128xf32>
    %30 = arith.subf %28, %29 : vector<1x128xf32>
    %31 = vector.broadcast %27 : vector<1x128xf32> to vector<16x128xf32>
    %32 = arith.mulf %7, %31 : vector<16x128xf32>
    %33 = vector.broadcast %30 : vector<1x128xf32> to vector<16x128xf32>
    %34 = arith.addf %32, %33 : vector<16x128xf32>
    %cst_13 = arith.constant 0.000000e+00 : f32
    %35 = vector.broadcast %cst_13 : f32 to vector<16x128xf32>
    %36 = arith.maximumf %34, %35 : vector<16x128xf32>
    %37 = arith.truncf %36 : vector<16x128xf32> to vector<16x128xbf16>
    %c0_14 = arith.constant 0 : index
    %c0_15 = arith.constant 0 : index
    %38 = vector.load %arg4[%c0_14, %c0_15] : memref<128x128xbf16, #tpu.memory_space<vmem>>, vector<128x128xbf16>
    %cst_16 = arith.constant dense<0.000000e+00> : vector<16x128xf32>
    %39 = tpu.matmul %37, %38, %cst_16 {dimension_numbers = #tpu.dot_dimension_numbers<[1], [0], [0], [1], [0, 0, 1, 1], [], []>} : vector<16x128xbf16>, vector<128x128xbf16>, vector<16x128xf32> -> vector<16x128xf32>
    %40 = vector.broadcast %4 : vector<16x1xf32> to vector<16x128xf32>
    %41 = arith.mulf %39, %40 : vector<16x128xf32>
    %cst_17 = arith.constant dense<0.000000e+00> : vector<128xf32>
    %42 = vector.multi_reduction <add>, %41, %cst_17 [0] : vector<16x128xf32> to vector<128xf32>
    %43 = vector.shape_cast %42 : vector<128xf32> to vector<1x128xf32>
    %cst_18 = arith.constant 1.250000e-01 : f32
    %44 = vector.broadcast %cst_18 : f32 to vector<1x128xf32>
    %45 = arith.mulf %43, %44 : vector<1x128xf32>
    %46 = arith.mulf %39, %41 : vector<16x128xf32>
    %cst_19 = arith.constant dense<0.000000e+00> : vector<128xf32>
    %47 = vector.multi_reduction <add>, %46, %cst_19 [0] : vector<16x128xf32> to vector<128xf32>
    %48 = vector.shape_cast %47 : vector<128xf32> to vector<1x128xf32>
    %cst_20 = arith.constant 1.250000e-01 : f32
    %49 = vector.broadcast %cst_20 : f32 to vector<1x128xf32>
    %50 = arith.mulf %48, %49 : vector<1x128xf32>
    %51 = arith.mulf %45, %45 : vector<1x128xf32>
    %52 = arith.subf %50, %51 : vector<1x128xf32>
    %cst_21 = arith.constant 0.000000e+00 : f32
    %53 = vector.broadcast %cst_21 : f32 to vector<1x128xf32>
    %54 = arith.maximumf %52, %53 : vector<1x128xf32>
    %c0_22 = arith.constant 0 : index
    %c0_23 = arith.constant 0 : index
    %55 = vector.load %arg5[%c0_22, %c0_23] : memref<1x128xf32, #tpu.memory_space<vmem>>, vector<1x128xf32>
    %cst_24 = arith.constant 9.99999974E-6 : f32
    %56 = vector.broadcast %cst_24 : f32 to vector<1x128xf32>
    %57 = arith.addf %54, %56 : vector<1x128xf32>
    %58 = math.rsqrt %57 : vector<1x128xf32>
    %59 = arith.mulf %55, %58 : vector<1x128xf32>
    %c0_25 = arith.constant 0 : index
    %c0_26 = arith.constant 0 : index
    %60 = vector.load %arg6[%c0_25, %c0_26] : memref<1x128xf32, #tpu.memory_space<vmem>>, vector<1x128xf32>
    %61 = arith.mulf %45, %59 : vector<1x128xf32>
    %62 = arith.subf %60, %61 : vector<1x128xf32>
    %63 = vector.broadcast %59 : vector<1x128xf32> to vector<16x128xf32>
    %64 = arith.mulf %39, %63 : vector<16x128xf32>
    %65 = vector.broadcast %62 : vector<1x128xf32> to vector<16x128xf32>
    %66 = arith.addf %64, %65 : vector<16x128xf32>
    %cst_27 = arith.constant 0.000000e+00 : f32
    %67 = vector.broadcast %cst_27 : f32 to vector<16x128xf32>
    %68 = arith.maximumf %66, %67 : vector<16x128xf32>
    %69 = arith.truncf %68 : vector<16x128xf32> to vector<16x128xbf16>
    %c0_28 = arith.constant 0 : index
    %c0_29 = arith.constant 0 : index
    %70 = vector.load %arg7[%c0_28, %c0_29] : memref<128x128xbf16, #tpu.memory_space<vmem>>, vector<128x128xbf16>
    %cst_30 = arith.constant dense<0.000000e+00> : vector<16x128xf32>
    %71 = tpu.matmul %69, %70, %cst_30 {dimension_numbers = #tpu.dot_dimension_numbers<[1], [0], [0], [1], [0, 0, 1, 1], [], []>} : vector<16x128xbf16>, vector<128x128xbf16>, vector<16x128xf32> -> vector<16x128xf32>
    %c0_31 = arith.constant 0 : index
    %c0_32 = arith.constant 0 : index
    %72 = vector.load %arg8[%c0_31, %c0_32] : memref<1x128xf32, #tpu.memory_space<vmem>>, vector<1x128xf32>
    %73 = vector.broadcast %72 : vector<1x128xf32> to vector<16x128xf32>
    %74 = arith.addf %71, %73 : vector<16x128xf32>
    %c0_33 = arith.constant 0 : index
    %c0_34 = arith.constant 0 : index
    %75 = vector.load %arg9[%c0_33, %c0_34] : memref<16x128xf32, #tpu.memory_space<vmem>>, vector<16x128xf32>
    tpu.vector_store %arg9[%c0_33, %c0_34], %74 {strides = array<i32>} : memref<16x128xf32, #tpu.memory_space<vmem>>, vector<16x128xf32>,
    return
  }
}

</mosaic_0001>

<bundles_post_ra>
// kernel: tpu_custom_call.1
= control target key start
LH: loop header
LB: loop body
LE: loop exit
PB: predicated region body
PF: predicated region fallthrough
CT: control target
= control target key end

     0   :  { %14 = vsyncpa [#allocation3], 0  ;;  %s1016_s0 = inlined_call_operand.hbm [shape: bf16[16,128], index: 0, kind: input, shape index: {}]   ;;  %s1017_s1 = inlined_call_operand.hbm [shape: bf16[128,128], index: 1, kind: input, shape index: {}]   ;;  %s1018_s2 = inlined_call_operand.vmem [shape: f32[1,128], index: 2, kind: input, shape index: {}]   ;;  %s1019_s3 = inlined_call_operand.vmem [shape: f32[1,128], index: 3, kind: input, shape index: {}]   ;;  %s1020_s4 = inlined_call_operand.hbm [shape: bf16[128,128], index: 4, kind: input, shape index: {}]   ;;  %s1021_s5 = inlined_call_operand.vmem [shape: f32[1,128], index: 5, kind: input, shape index: {}]   ;;  %s1022_s6 = inlined_call_operand.vmem [shape: f32[1,128], index: 6, kind: input, shape index: {}]   ;;  %s1023_s7 = inlined_call_operand.hbm [shape: bf16[128,128], index: 7, kind: input, shape index: {}]   ;;  %s1024_s8 = inlined_call_operand.vmem [shape: f32[1,128], index: 8, kind: input, shape index: {}]   ;;  %s1025_s9 = inlined_call_operand.hbm [shape: f32[16,128], index: 9, kind: output, shape index: {}]  }
   0x1   :  { %15 = vsyncpa [#allocation6], 0 }
   0x2   :  { %16 = vsyncpa [#allocation9], 0 }
   0x3   :  { %17 = vsyncpa [#allocation4], 0  ;;  %s818_s30 = smov [#allocation5]   ;;  %s819_s11 = smov [#allocation2]  }
   0x4   :  { %s35_s10 = sshll.u32 %s818_s30, 4  ;;  %s23_s12 = sshll.u32 %s819_s11, 4  ;;  %s36_s10 = int_to_ptr.vmem [resolvable:$true] %s35_s10  ;;  %s879_s12 = int_to_ptr.vmem [resolvable:$true] %s23_s12 }
   0x5   :  { %s700_s15 = scalar_lea.hbm %s1017_s1, 1024 }
   0x6   :  { %p701_p0 = scmp.ne.s32.totalorder %s1017_s1, %s700_s15  ;;  %p704_p1 = scmp.lt.u32.totalorder %s700_s15, %s1017_s1 }
   0x8   :  { %p706_p2 = pnand %p704_p1, %p701_p0 }
   0xa   :  { %709 = shalt.err (!%p706_p2)
}
   0xb   :  { %s710_s20 = scalar_lea.vmem %s36_s10, 1024  ;;  %p715_p4 = scmp.lt.s32.totalorder %s36_s10, %s36_s10 }
   0xc   :  { %p711_p3 = scmp.ne.s32.totalorder %s36_s10, %s710_s20  ;;  %p716_p5 = scmp.lt.s32.totalorder %s710_s20, %s710_s20 }
   0xe   :  { %p717_p6 = por %p716_p5, %p715_p4 }
  0x10   :  { %p718_p7 = pnand %p717_p6, %p711_p3 }
  0x12   :  { %721 = shalt.err (!%p718_p7)
}
  0x13   :  { %s820_s21 = smov 64   ;;  %s821_s22 = smov 4  }
  0x14   :  { %41 = dma.hbm_to_vmem [thread:$0]  %s1017_s1, 1024, %s36_s10, [#allocation6], %s820_s21, %s820_s21, %s821_s22  }
  0x15   :  { %s722_s27 = scalar_lea.hbm %s1016_s0, 128 }
  0x16   :  { %p723_p8 = scmp.ne.s32.totalorder %s1016_s0, %s722_s27  ;;  %p726_p9 = scmp.lt.u32.totalorder %s722_s27, %s1016_s0 }
  0x18   :  { %p728_p10 = pnand %p726_p9, %p723_p8 }
  0x1a   :  { %731 = shalt.err (!%p728_p10)
}
  0x1b   :  { %s732_s13 = scalar_lea.vmem %s879_s12, 128  ;;  %p737_p12 = scmp.lt.s32.totalorder %s879_s12, %s879_s12 }
  0x1c   :  { %p733_p11 = scmp.ne.s32.totalorder %s879_s12, %s732_s13  ;;  %p738_p13 = scmp.lt.s32.totalorder %s732_s13, %s732_s13 }
  0x1e   :  { %p739_p0 = por %p738_p13, %p737_p12 }
  0x20   :  { %p740_p1 = pnand %p739_p0, %p733_p11 }
  0x22   :  { %743 = shalt.err (!%p740_p1)
}
  0x23   :  { %29 = dma.hbm_to_vmem [thread:$0]  %s1016_s0, 128, %s879_s12, [#allocation3], %s820_s21, %s820_s21, %s821_s22  }
  0x24   :  { %s822_s14 = smov [#allocation7]   ;;  %s823_s16 = smov [#allocation8]  }
  0x25   :  { %s51_s15 = sshll.u32 %s822_s14, 4  ;;  %s67_s17 = sshll.u32 %s823_s16, 4  ;;  %s52_s15 = int_to_ptr.vmem [resolvable:$true] %s51_s15  ;;  %s916_s17 = int_to_ptr.vmem [resolvable:$true] %s67_s17 }
  0x26   :  { %s744_s20 = scalar_lea.hbm %s1020_s4, 1024 }
  0x27   :  { %p745_p2 = scmp.ne.s32.totalorder %s1020_s4, %s744_s20  ;;  %p748_p3 = scmp.lt.u32.totalorder %s744_s20, %s1020_s4 }
  0x29   :  { %p750_p4 = pnand %p748_p3, %p745_p2 }
  0x2b   :  { %753 = shalt.err (!%p750_p4)
}
  0x2c   :  { %s754_s0 = scalar_lea.vmem %s52_s15, 1024  ;;  %p759_p6 = scmp.lt.s32.totalorder %s52_s15, %s52_s15 }
  0x2d   :  { %p755_p5 = scmp.ne.s32.totalorder %s52_s15, %s754_s0  ;;  %p760_p7 = scmp.lt.s32.totalorder %s754_s0, %s754_s0 }
  0x2f   :  { %p761_p8 = por %p760_p7, %p759_p6 }
  0x31   :  { %p762_p9 = pnand %p761_p8, %p755_p5 }
  0x33   :  { %765 = shalt.err (!%p762_p9)
}
  0x34   :  { %57 = dma.hbm_to_vmem [thread:$0]  %s1020_s4, 1024, %s52_s15, [#allocation6], %s820_s21, %s820_s21, %s821_s22  }
  0x35   :  { %s766_s30 = scalar_lea.hbm %s1023_s7, 1024 }
  0x36   :  { %p767_p10 = scmp.ne.s32.totalorder %s1023_s7, %s766_s30  ;;  %p770_p11 = scmp.lt.u32.totalorder %s766_s30, %s1023_s7 }
  0x38   :  { %p772_p12 = pnand %p770_p11, %p767_p10 }
  0x3a   :  { %775 = shalt.err (!%p772_p12)
}
  0x3b   :  { %s776_s14 = scalar_lea.vmem %s916_s17, 1024  ;;  %p781_p0 = scmp.lt.s32.totalorder %s916_s17, %s916_s17 }
  0x3c   :  { %p777_p13 = scmp.ne.s32.totalorder %s916_s17, %s776_s14  ;;  %p782_p1 = scmp.lt.s32.totalorder %s776_s14, %s776_s14 }
  0x3e   :  { %p783_p2 = por %p782_p1, %p781_p0 }
  0x40   :  { %p784_p3 = pnand %p783_p2, %p777_p13 }
  0x42   :  { %787 = shalt.err (!%p784_p3)
}
  0x43   :  { %73 = dma.hbm_to_vmem [thread:$0]  %s1023_s7, 1024, %s916_s17, [#allocation9], %s820_s21, %s820_s21, %s821_s22  }
  0x44   :  { %810 = dma.done.wait [#allocation3], 128  }
  0x45   :  { %811 = vsyncadd [#allocation3], 4294967168 }
  0x46   :  { %812 = dma.done.wait [#allocation6], 2048  }
  0x47   :  { %813 = vsyncadd [#allocation6], 4294965248 }
  0x48   :  { %814 = dma.done.wait [#allocation9], 1024  }
  0x49   :  { %815 = vsyncadd [#allocation9], 4294966272  ;;  %v824_v0 = vmov 0.0   ;;  %vm825_vm0 = vmmov 0   ;;  %v671_v1 = vld [vmem:[#allocation5] sm:$0xff]   ;;  %v672_v2 = vld [vmem:[#allocation5 + $0x8] sm:$0xff]   ;;  %v242_v45 = vlaneseq }
  0x4a   :  { %600 = vmatprep.subr.bf16.mxu0 %v824_v0  ;;  %616 = vmatprep.mubr.msk.bf16.mxu0 %vm825_vm0, %v824_v0  ;;  %v673_v3 = vld [vmem:[#allocation5 + $0x10] sm:$0xff]   ;;  %v674_v4 = vld [vmem:[#allocation5 + $0x18] sm:$0xff]   ;;  %v675_v5 = vld [vmem:[#allocation5 + $0x20] sm:$0xff]   ;;  %s826_s20 = smov [#allocation10]  }
  0x4b   :  { %620 = vmatprep.subr.bf16.mxu1 %v824_v0  ;;  %636 = vmatprep.mubr.msk.bf16.mxu1 %vm825_vm0, %v824_v0  ;;  %v676_v6 = vld [vmem:[#allocation5 + $0x28] sm:$0xff]   ;;  %v677_v7 = vld [vmem:[#allocation5 + $0x30] sm:$0xff]   ;;  %v678_v8 = vld [vmem:[#allocation5 + $0x38] sm:$0xff]   ;;  %v243_v46 = vshrl.u32 %v242_v45, 7 }
  0x4c   :  { %601 = vmatpush3.bf16.msra.mxu0 %v671_v1  ;;  %v679_v9 = vld [vmem:[#allocation2] sm:$0xff]   ;;  %v680_v10 = vld [vmem:[#allocation7] sm:$0xff]   ;;  %v681_v11 = vld [vmem:[#allocation7 + $0x8] sm:$0xff]  }
  0x4d   :  { %602 = vmatprep.subr.bf16.mxu0 %v824_v0  ;;  %621 = vmatpush3.bf16.msra.mxu1 %v680_v10  ;;  %v682_v12 = vld [vmem:[#allocation7 + $0x10] sm:$0xff]   ;;  %v683_v13 = vld [vmem:[#allocation7 + $0x18] sm:$0xff]   ;;  %v684_v14 = vld [vmem:[#allocation7 + $0x20] sm:$0xff]   ;;  %v979_v48 = vsub.s32 0, %v243_v46 }
  0x4e   :  { %622 = vmatprep.subr.bf16.mxu1 %v824_v0  ;;  %v685_v15 = vld [vmem:[#allocation7 + $0x28] sm:$0xff]   ;;  %v686_v16 = vld [vmem:[#allocation7 + $0x30] sm:$0xff]   ;;  %v687_v17 = vld [vmem:[#allocation7 + $0x38] sm:$0xff]  }
  0x4f   :  { %v234_v47 = vld [vmem:[%s1018_s2] sm:$0x1]  ;;  %v688_v63 = vld [vmem:[#allocation8] sm:$0xff]   ;;  %v689_v1 = vld [vmem:[#allocation8 + $0x8] sm:$0xff]  }
  0x50   :  { %603 = vmatpush3.bf16.msra.mxu0 %v672_v2  ;;  %v238_v51 = vld [vmem:[%s1019_s3] sm:$0x1]  ;;  %v690_v2 = vld [vmem:[#allocation8 + $0x10] sm:$0xff]  }
  0x51   :  { %604 = vmatprep.subr.bf16.mxu0 %v824_v0  ;;  %623 = vmatpush3.bf16.msra.mxu1 %v681_v11 }
  0x52   :  { %624 = vmatprep.subr.bf16.mxu1 %v824_v0 }
  0x54   :  { %605 = vmatpush3.bf16.msra.mxu0 %v673_v3  ;;  %v691_v3 = vld [vmem:[#allocation8 + $0x18] sm:$0xff]  }
  0x55   :  { %606 = vmatprep.subr.bf16.mxu0 %v824_v0  ;;  %625 = vmatpush3.bf16.msra.mxu1 %v682_v12 }
  0x56   :  { %626 = vmatprep.subr.bf16.mxu1 %v824_v0 }
  0x58   :  { %607 = vmatpush3.bf16.msra.mxu0 %v674_v4  ;;  %v692_v4 = vld [vmem:[#allocation8 + $0x20] sm:$0xff]  }
  0x59   :  { %608 = vmatprep.subr.bf16.mxu0 %v824_v0  ;;  %627 = vmatpush3.bf16.msra.mxu1 %v683_v13 }
  0x5a   :  { %628 = vmatprep.subr.bf16.mxu1 %v824_v0 }
  0x5c   :  { %609 = vmatpush3.bf16.msra.mxu0 %v675_v5  ;;  %v693_v5 = vld [vmem:[#allocation8 + $0x28] sm:$0xff]  }
  0x5d   :  { %610 = vmatprep.subr.bf16.mxu0 %v824_v0  ;;  %629 = vmatpush3.bf16.msra.mxu1 %v684_v14 }
  0x5e   :  { %630 = vmatprep.subr.bf16.mxu1 %v824_v0 }
  0x60   :  { %611 = vmatpush3.bf16.msra.mxu0 %v676_v6  ;;  %v694_v6 = vld [vmem:[#allocation8 + $0x30] sm:$0xff]  }
  0x61   :  { %612 = vmatprep.subr.bf16.mxu0 %v824_v0  ;;  %631 = vmatpush3.bf16.msra.mxu1 %v685_v15 }
  0x62   :  { %632 = vmatprep.subr.bf16.mxu1 %v824_v0 }
  0x64   :  { %613 = vmatpush3.bf16.msra.mxu0 %v677_v7  ;;  %v695_v7 = vld [vmem:[#allocation8 + $0x38] sm:$0xff]  }
  0x65   :  { %614 = vmatprep.subr.bf16.mxu0 %v824_v0  ;;  %633 = vmatpush3.bf16.msra.mxu1 %v686_v16 }
  0x66   :  { %634 = vmatprep.subr.bf16.mxu1 %v824_v0 }
  0x68   :  { %615 = vmatpush3.bf16.msra.mxu0 %v678_v8 }
  0x69   :  { %640 = vmatprep.subr.bf16.mxu0 %v824_v0  ;;  %635 = vmatpush3.bf16.msra.mxu1 %v687_v17 }
  0x6b   :  { %617 = vmatmul.mubr.bf16.vlgmr.msra.gmra.mrb[0].mxu0 %v679_v9 }
  0x6c   :  { %656 = vmatprep.mubr.msk.bf16.mxu0 %vm825_vm0, %v824_v0  ;;  %641 = vmatpush3.bf16.msra.mxu0 %v688_v63 }
  0x6d   :  { %642 = vmatprep.subr.bf16.mxu0 %v824_v0 }
  0x70   :  { %643 = vmatpush3.bf16.msra.mxu0 %v689_v1 }
  0x71   :  { %644 = vmatprep.subr.bf16.mxu0 %v824_v0 }
  0x74   :  { %645 = vmatpush3.bf16.msra.mxu0 %v690_v2 }
  0x75   :  { %646 = vmatprep.subr.bf16.mxu0 %v824_v0 }
  0x78   :  { %647 = vmatpush3.bf16.msra.mxu0 %v691_v3 }
  0x79   :  { %648 = vmatprep.subr.bf16.mxu0 %v824_v0 }
  0x7c   :  { %649 = vmatpush3.bf16.msra.mxu0 %v692_v4 }
  0x7d   :  { %650 = vmatprep.subr.bf16.mxu0 %v824_v0 }
  0x80   :  { %651 = vmatpush3.bf16.msra.mxu0 %v693_v5 }
  0x81   :  { %652 = vmatprep.subr.bf16.mxu0 %v824_v0 }
  0x84   :  { %653 = vmatpush3.bf16.msra.mxu0 %v694_v6 }
  0x85   :  { %654 = vmatprep.subr.bf16.mxu0 %v824_v0 }
  0x88   :  { %655 = vmatpush3.bf16.msra.mxu0 %v695_v7 }
 0x13e   :  { %v204_v18 = vpop.f32.mrb[0].mxu0 }
 0x13f   :  { %v618_v19 = vpop.f32.mrb[1].mxu0  ;;  %v221_v23 = vmul.f32 %v204_v18, %v204_v18 }
 0x140   :  { %v207_v20 = vpop.f32.mrb[2].mxu0 }
 0x141   :  { %v212_v21 = vmul.f32 0.0, %v207_v20  ;;  %v619_v22 = vpop.f32.mrb[3].mxu0 }
 0x143   :  { %v213_v24 = vadd.f32 %v212_v21, %v204_v18  ;;  %v222_v25 = vmul.f32 %v212_v21, %v207_v20 }
 0x145   :  { %v214_v26 = vrot.slane %v213_v24, 4  ;;  %v223_v27 = vadd.f32 %v222_v25, %v221_v23 }
 0x147   :  { %v215_v28 = vadd.f32 %v214_v26, %v213_v24  ;;  %v224_v29 = vrot.slane %v223_v27, 4 }
 0x149   :  { %v216_v30 = vrot.slane %v215_v28, 2  ;;  %v225_v31 = vadd.f32 %v224_v29, %v223_v27 }
 0x14b   :  { %v217_v32 = vadd.f32 %v216_v30, %v215_v28  ;;  %v226_v33 = vrot.slane %v225_v31, 2 }
 0x14d   :  { %v218_v34 = vrot.slane %v217_v32, 1  ;;  %v227_v35 = vadd.f32 %v226_v33, %v225_v31 }
 0x14f   :  { %v219_v36 = vadd.f32 %v218_v34, %v217_v32  ;;  %v228_v37 = vrot.slane %v227_v35, 1  ;;  %v388_v34 = vld [vmem:[%s1021_s5] sm:$0x1] }
 0x151   :  { %v220_v38 = vmul.f32 0.125, %v219_v36  ;;  %v229_v39 = vadd.f32 %v228_v37, %v227_v35  ;;  %v392_v37 = vld [vmem:[%s1022_s6] sm:$0x1]  ;;  %s533_s6 = sshll.u32 %s826_s20, 4  ;;  %s534_s6 = int_to_ptr.vmem [resolvable:$true] %s533_s6 }
 0x152   :  { %s788_s23 = scalar_lea.vmem %s534_s6, 256  ;;  %p793_p5 = scmp.lt.s32.totalorder %s534_s6, %s534_s6 }
 0x153   :  { %v230_v40 = vmul.f32 0.125, %v229_v39  ;;  %v231_v41 = vmul.f32 %v220_v38, %v220_v38  ;;  %p789_p4 = scmp.ne.s32.totalorder %s534_s6, %s788_s23  ;;  %p794_p6 = scmp.lt.s32.totalorder %s788_s23, %s788_s23 }
 0x155   :  { %v232_v42 = vsub.f32 %v230_v40, %v231_v41  ;;  %p795_p7 = por %p794_p6, %p793_p5 }
 0x157   :  { %v233_v43 = vmax.f32 %v232_v42, 0.0  ;;  %p796_p8 = pnand %p795_p7, %p789_p4 }
 0x159   :  { %v235_v44 = vadd.f32 1e-05, %v233_v43 }
 0x15b   :  { %696 = vrsqrt.f32 %v235_v44 }
 0x165   :  { %v697_v49 = vpop.eup %696 }
 0x166   :  { %v237_v50 = vmul.f32 %v697_v49, %v234_v47 }
 0x168   :  { %v239_v52 = vmul.f32 %v237_v50, %v220_v38  ;;  %v245_v53 = vrot.slane %v237_v50, %v979_v48  ;;  %v564_v50 = vld [vmem:[%s1024_s8] ss:$0 sm:$0xff] }
 0x16a   :  { %v240_v54 = vsub.f32 %v238_v51, %v239_v52  ;;  %v247_v55 = vmul.f32 %v245_v53, %v204_v18  ;;  %v248_v56 = vmul.f32 %v245_v53, %v207_v20 }
 0x16c   :  { %v253_v57 = vrot.slane %v240_v54, %v979_v48 }
 0x16e   :  { %v256_v58 = vadd.f32 %v253_v57, %v248_v56  ;;  %v255_v59 = vadd.f32 %v253_v57, %v247_v55 }
 0x170   :  { %v257_v60 = vmax.f32 %v255_v59, 0.0  ;;  %v258_v61 = vmax.f32 %v256_v58, 0.0 }
 0x172   :  { %v259_v62 = vpack.c.bf16 %v258_v61, %v257_v60 }
 0x174   :  { %637 = vmatmul.mubr.bf16.vlgmr.msra.gmra.mrb[0].mxu1 %v259_v62 }
 0x247   :  { %v358_v8 = vpop.f32.mrb[0].mxu1 }
 0x248   :  { %v638_v9 = vpop.f32.mrb[1].mxu1  ;;  %v375_v13 = vmul.f32 %v358_v8, %v358_v8 }
 0x249   :  { %v361_v10 = vpop.f32.mrb[2].mxu1 }
 0x24a   :  { %v366_v11 = vmul.f32 0.0, %v361_v10  ;;  %v639_v12 = vpop.f32.mrb[3].mxu1 }
 0x24c   :  { %v367_v14 = vadd.f32 %v366_v11, %v358_v8  ;;  %v376_v15 = vmul.f32 %v366_v11, %v361_v10 }
 0x24e   :  { %v368_v16 = vrot.slane %v367_v14, 4  ;;  %v377_v17 = vadd.f32 %v376_v15, %v375_v13 }
 0x250   :  { %v369_v18 = vadd.f32 %v368_v16, %v367_v14  ;;  %v378_v19 = vrot.slane %v377_v17, 4 }
 0x252   :  { %v370_v20 = vrot.slane %v369_v18, 2  ;;  %v379_v21 = vadd.f32 %v378_v19, %v377_v17 }
 0x254   :  { %v371_v22 = vadd.f32 %v370_v20, %v369_v18  ;;  %v380_v23 = vrot.slane %v379_v21, 2 }
 0x256   :  { %v372_v24 = vrot.slane %v371_v22, 1  ;;  %v381_v0 = vadd.f32 %v380_v23, %v379_v21 }
 0x258   :  { %v373_v25 = vadd.f32 %v372_v24, %v371_v22  ;;  %v382_v26 = vrot.slane %v381_v0, 1 }
 0x25a   :  { %v374_v27 = vmul.f32 0.125, %v373_v25  ;;  %v383_v28 = vadd.f32 %v382_v26, %v381_v0 }
 0x25c   :  { %v384_v29 = vmul.f32 0.125, %v383_v28  ;;  %v385_v30 = vmul.f32 %v374_v27, %v374_v27 }
 0x25e   :  { %v386_v31 = vsub.f32 %v384_v29, %v385_v30 }
 0x260   :  { %v387_v32 = vmax.f32 %v386_v31, 0.0 }
 0x262   :  { %v389_v33 = vadd.f32 1e-05, %v387_v32 }
 0x264   :  { %698 = vrsqrt.f32 %v389_v33 }
 0x26e   :  { %v699_v35 = vpop.eup %698 }
 0x26f   :  { %v391_v36 = vmul.f32 %v699_v35, %v388_v34 }
 0x271   :  { %v393_v38 = vmul.f32 %v391_v36, %v374_v27  ;;  %v399_v39 = vrot.slane %v391_v36, %v979_v48 }
 0x273   :  { %v394_v40 = vsub.f32 %v392_v37, %v393_v38  ;;  %v401_v41 = vmul.f32 %v399_v39, %v358_v8  ;;  %v402_v42 = vmul.f32 %v399_v39, %v361_v10 }
 0x275   :  { %v407_v43 = vrot.slane %v394_v40, %v979_v48 }
 0x277   :  { %v409_v44 = vadd.f32 %v407_v43, %v401_v41  ;;  %v410_v45 = vadd.f32 %v407_v43, %v402_v42 }
 0x279   :  { %v412_v46 = vmax.f32 %v410_v45, 0.0  ;;  %v411_v47 = vmax.f32 %v409_v44, 0.0 }
 0x27b   :  { %v413_v49 = vpack.c.bf16 %v412_v46, %v411_v47 }
 0x27d   :  { %657 = vmatmul.mubr.bf16.vlgmr.msra.gmra.mrb[4].mxu0 %v413_v49 }
 0x350   :  { %v519_v51 = vpop.f32.mrb[4].mxu0 }
 0x351   :  { %v520_v52 = vadd.f32 %v564_v50, %v519_v51  ;;  %v658_v53 = vpop.f32.mrb[5].mxu0 }
 0x352   :  { %v522_v54 = vpop.f32.mrb[6].mxu0 }
 0x353   :  { %526 = vst [vmem:[#allocation10] sm:$0xff] %v520_v52  ;;  %v523_v55 = vadd.f32 %v564_v50, %v522_v54  ;;  %v659_v48 = vpop.f32.mrb[7].mxu0 }
 0x355   :  { %527 = vst [vmem:[#allocation10 + $0x8] sm:$0xff] %v523_v55 }
 0x356   :  { %799 = shalt.err (!%p796_p8)
}
 0x357   :  { %s800_s25 = scalar_lea.hbm %s1025_s9, 256 }
 0x358   :  { %p801_p9 = scmp.ne.s32.totalorder %s1025_s9, %s800_s25  ;;  %p804_p10 = scmp.lt.u32.totalorder %s800_s25, %s1025_s9 }
 0x35a   :  { %p806_p11 = pnand %p804_p10, %p801_p9 }
 0x35c   :  { %809 = shalt.err (!%p806_p11)
}
 0x35d   :  { %s827_s28 = smov 128   ;;  %s828_s29 = smov 8  }
 0x35e   :  { %539 = dma.vmem_to_hbm [thread:$0]  %s534_s6, 256, %s1025_s9, [#allocation4], %s827_s28, %s827_s28, %s828_s29  }
 0x35f   :  { %816 = dma.done.wait [#allocation4], 256  }
 0x360   :  { %817 = vsyncadd [#allocation4], 4294967040 }
 0x361   :  { %543 = vsyncpa [#allocation3], 1 }
 0x362   :  { %544 = vsyncpa [#allocation6], 1 }
 0x363   :  { %545 = vsyncpa [#allocation9], 1 }
 0x364   :  { %546 = vsyncpa [#allocation4], 1 }

</bundles_post_ra>
